<compile_context>
chip_gen: v7x
topology: tpu7x:2x2x1
jax: 0.10.0
libtpu: 0.0.40
codegen_flags: <defaults>
</compile_context>

<pallas_src>
import math

import jax
import jax.numpy as jnp
from jax.experimental import pallas as pl
from jax.experimental.pallas import tpu as pltpu


def _round_up(v, m):
    return (v + m - 1) // m * m


def _cdiv(a, b):
    return -(-a // b)


def _make_kernel(toh, wop, k3, ct):
    """One (cout-tile, image, row-band) step: 3 MXU matmuls (K = 3*Cin), bias add, cast."""
    m = toh * wop

    def kernel(be_ref, bo_ref, w_ref, b_ref, o_ref):
        # be_ref/bo_ref: (toh+1, wop, k3) bf16 row-parity, kw-folded bands (1-row halo on be).
        # w_ref: (3, k3, ct) bf16 (kh-major taps);  b_ref: (1, ct) f32;  o_ref: (m, ct).
        lhs0 = be_ref[0:toh, :, :].reshape(m, k3)          # kh = 0 (padded row 2*ho)
        lhs1 = bo_ref[0:toh, :, :].reshape(m, k3)          # kh = 1 (padded row 2*ho+1)
        lhs2 = be_ref[1:toh + 1, :, :].reshape(m, k3)      # kh = 2 (padded row 2*ho+2)
        acc = jnp.dot(lhs0, w_ref[0], preferred_element_type=jnp.float32)
        acc = acc + jnp.dot(lhs1, w_ref[1], preferred_element_type=jnp.float32)
        acc = acc + jnp.dot(lhs2, w_ref[2], preferred_element_type=jnp.float32)
        o_ref[...] = (acc + b_ref[...]).astype(o_ref.dtype)

    return kernel


def downsample_forward(x_nchw, weight, bias, t=None, *, tm_target=512,
                       compute_dtype=jnp.bfloat16):
    """Downsample.forward(x, t): Conv2d(C, C, 3, stride=2, pad=1).  `t` is unused.

    NOTE: inputs/weights are cast to `compute_dtype` (bf16 by default) with f32 MXU
    accumulation — an intentional precision tradeoff vs. an all-f32 convolution.
    """
    del t
    N, C, H, W = x_nchw.shape
    Cout = weight.shape[0]
    Ho = (H + 2 - 3) // 2 + 1
    Wo = (W + 2 - 3) // 2 + 1
    out_dtype = x_nchw.dtype
    itemsize = jnp.dtype(out_dtype).itemsize

    K3 = 3 * C                                       # matmul K: the 3 kw taps folded into K
    Coutp = _round_up(Cout, 128)                     # lane-dense output stores
    Wop = _round_up(Wo, 8)                           # sublane-aligned (TOH,Wop,K3)->(M,K3) fold

    # ---- generation-aware VMEM budget (v7x: 64 MiB/TC, v5e/v6e: 128 MiB) ----
    try:
        vmem_cap = int(pltpu.get_tpu_info().vmem_capacity_bytes)
    except Exception:
        vmem_cap = 64 * 1024 * 1024                  # conservative default (v7x-sized)
    budget = int(0.55 * vmem_cap)
    if vmem_cap >= 100 * 1024 * 1024:
        tm_target *= 2                               # bigger tiles on 128 MiB parts

    def vmem_est(toh, ct):
        lane_k = _round_up(K3, 128)
        band = (toh + 1) * Wop * lane_k * 2                      # one bf16 band block
        wgt = 3 * _round_up(K3, 8) * ct * 2 + 8 * ct * 4         # weights + bias
        m = toh * Wop
        outb = m * ct * itemsize
        acc = m * ct * 4 + 3 * m * lane_k * 2                    # f32 acc + staged LHS slack
        return 2 * 2 * band + 2 * outb + 2 * wgt + acc           # x2: double buffering

    # ---- Cout tile: keep the whole weight slab resident unless it blows the budget ----
    CT = Coutp
    if 3 * _round_up(K3, 8) * CT * 2 > budget // 3:
        CT = 256 if Coutp % 256 == 0 else 128
    NC = Coutp // CT

    # ---- output-row tile: prefer full-height bands (R=1, no band gather) ----
    if vmem_est(Ho, CT) <= budget:
        TOH = Ho
    else:
        TOH = min(Ho, max(1, tm_target // Wop))
        while TOH > 1 and vmem_est(TOH, CT) > budget:
            TOH = max(1, TOH // 2)
    R = _cdiv(Ho, TOH)
    TOH = _cdiv(Ho, R)                               # minimal padded rows for this band count
    if vmem_cap <= 64 * 1024 * 1024 and N * R * NC == 1 and Ho > 1:
        R = 2                                        # v7x megacore: give both TCs work
        TOH = _cdiv(Ho, R)
    Hop = R * TOH
    M = TOH * Wop

    # ---- wrapper glue: NHWC, zero-pad, column-parity kw-fold, row-parity split (~1.5x HBM) ----
    x = jnp.transpose(x_nchw, (0, 2, 3, 1)).astype(compute_dtype)   # NHWC
    xp = jnp.pad(x, ((0, 0),
                     (1, 2 * Hop + 1 - H),
                     (1, 2 * Wop + 1 - W),
                     (0, 0)))                                       # (N, 2*Hop+2, 2*Wop+2, C)
    ev = xp[:, :, 0::2, :]                                          # even padded cols (kw=0,2)
    od = xp[:, :, 1::2, :]                                          # odd  padded cols (kw=1)
    # kw-folded rows: lanes = [kw=0 | kw=1 | kw=2] channels -> (N, 2*Hop+2, Wop, 3C)
    b_all = jnp.concatenate([ev[:, :, :Wop, :], od[:, :, :Wop, :], ev[:, :, 1:Wop + 1, :]],
                            axis=-1)
    be = b_all[:, 0::2]                                             # even padded rows (kh=0,2)
    bo = b_all[:, 1::2]                                             # odd  padded rows (kh=1)
    if R == 1:
        be_b, bo_b = be[:, None], bo[:, None]                       # (N, 1, Hop+1, Wop, 3C)
    else:                                                           # 1-row-halo band gather
        row_idx = jnp.arange(R)[:, None] * TOH + jnp.arange(TOH + 1)[None, :]
        be_b, bo_b = be[:, row_idx], bo[:, row_idx]                 # (N, R, TOH+1, Wop, 3C)

    # PyTorch weight (Cout, Cin, kh, kw) -> (3, 3*Cin, Coutp), lanes kw-major / channel-minor
    # to match the kw-fold above; bias -> (1, Coutp) f32.
    w3 = jnp.transpose(weight, (2, 3, 1, 0)).reshape(3, K3, Cout)
    w3 = jnp.pad(w3, ((0, 0), (0, 0), (0, Coutp - Cout))).astype(compute_dtype)
    bias_row = jnp.pad(bias, (0, Coutp - Cout)).reshape(1, Coutp).astype(jnp.float32)

    kernel = _make_kernel(TOH, Wop, K3, CT)
    band_spec = pl.BlockSpec((None, None, TOH + 1, Wop, K3),
                             lambda j, n, r: (n, r, 0, 0, 0))
    out_spec = pl.BlockSpec((None, None, M, CT), lambda j, n, r: (n, r, 0, j))

    flops = 2 * N * R * M * 3 * K3 * Coutp
    bytes_accessed = (NC * 2 * N * R * (TOH + 1) * Wop * K3 * 2
                      + 3 * K3 * Coutp * 2 + Coutp * 4
                      + N * R * M * Coutp * itemsize)
    vmem_limit = int(min(max(2 * vmem_est(TOH, CT), 32 * 1024 * 1024),
                         int(0.75 * vmem_cap)))

    def _run(single_buffer_resident):
        if NC == 1 and single_buffer_resident:
            # Resident weights/bias (constant index_map): don't double-buffer the slab.
            w_spec = pl.BlockSpec((3, K3, CT), lambda j, n, r: (0, 0, 0),
                                  pipeline_mode=pl.Buffered(1))
            b_spec = pl.BlockSpec((1, CT), lambda j, n, r: (0, 0),
                                  pipeline_mode=pl.Buffered(1))
        else:
            w_spec = pl.BlockSpec((3, K3, CT), lambda j, n, r: (0, 0, j))
            b_spec = pl.BlockSpec((1, CT), lambda j, n, r: (0, j))
        return pl.pallas_call(
            kernel,
            out_shape=jax.ShapeDtypeStruct((N, R, M, Coutp), out_dtype),
            grid=(NC, N, R),
            in_specs=[band_spec, band_spec, w_spec, b_spec],
            out_specs=out_spec,
            compiler_params=pltpu.CompilerParams(
                dimension_semantics=("parallel", "parallel", "parallel"),
                vmem_limit_bytes=vmem_limit),
            cost_estimate=pl.CostEstimate(flops=int(flops), transcendentals=0,
                                          bytes_accessed=int(bytes_accessed)),
        )(be_b, bo_b, w3, bias_row)

    try:
        out = _run(True)
    except Exception:   # pl.Buffered(1) unsupported on this jax version -> default buffering
        out = _run(False)

    out = out.reshape(N, Hop, Wop, Coutp)[:, :Ho, :Wo, :Cout]       # drop row/col/chan padding
    return jnp.transpose(out, (0, 3, 1, 2))                         # back to NCHW


if __name__ == "__main__":
    key = jax.random.PRNGKey(0)
    k_x, k_w, k_b, k_t = jax.random.split(key, 4)

    N, C, H, W = 2, 4, 16, 16
    x = jax.random.normal(k_x, (N, C, H, W), dtype=jnp.float32)
    t = jax.random.normal(k_t, (N, 32), dtype=jnp.float32)          # unused, as in the module

    # deterministic Conv2d-style init (uniform in +-1/sqrt(fan_in))
    fan_in = C * 3 * 3
    bound = 1.0 / math.sqrt(fan_in)
    weight = jax.random.uniform(k_w, (C, C, 3, 3), jnp.float32, -bound, bound)
    bias = jax.random.uniform(k_b, (C,), jnp.float32, -bound, bound)

    y = jax.block_until_ready(downsample_forward(x, weight, bias, t))

    # reference: XLA conv with the same semantics as torch.nn.Conv2d (NCHW)
    y_ref = jax.lax.conv_general_dilated(
        x, weight, window_strides=(2, 2), padding=((1, 1), (1, 1)),
        dimension_numbers=("NCHW", "OIHW", "NCHW")) + bias.reshape(1, C, 1, 1)

    assert y.shape == (N, C, H // 2, W // 2), y.shape
    max_err = float(jnp.max(jnp.abs(y - y_ref)))
    # bf16 inputs with f32 accumulation -> loosened tolerance vs. the all-f32 reference.
    assert jnp.allclose(y, y_ref, atol=5e-2, rtol=5e-2), f"max abs err {max_err}"
    print("KERNEL_OK")
</pallas_src>

<mosaic_0001>
module attributes {stable_mosaic.version = 11 : i64} {
  func.func @kernel(%arg0: i32, %arg1: i32, %arg2: i32, %arg3: memref<1x1x9x8x12xbf16, #tpu.memory_space<vmem>>, %arg4: memref<1x1x9x8x12xbf16, #tpu.memory_space<vmem>>, %arg5: memref<3x12x128xbf16, #tpu.memory_space<vmem>>, %arg6: memref<1x128xf32, #tpu.memory_space<vmem>>, %arg7: memref<1x1x64x128xf32, #tpu.memory_space<vmem>>) attributes {dimension_semantics = [#tpu.dimension_semantics<parallel>, #tpu.dimension_semantics<parallel>, #tpu.dimension_semantics<parallel>], iteration_bounds = array<i64: 1, 2, 1>, scalar_prefetch = 0 : i64, scratch_operands = 0 : i64, tpu.core_type = #tpu.core_type<tc>, window_params = [{transform_indices = @transform_0, window_bounds = array<i64: 1, 1, 9, 8, 12>}, {transform_indices = @transform_1, window_bounds = array<i64: 1, 1, 9, 8, 12>}, {pipeline_mode = #tpu.pipeline_mode<synchronous>, transform_indices = @transform_2, window_bounds = array<i64: 3, 12, 128>}, {pipeline_mode = #tpu.pipeline_mode<synchronous>, transform_indices = @transform_3, window_bounds = array<i64: 1, 128>}, {transform_indices = @transform_4, window_bounds = array<i64: 1, 1, 64, 128>}]} {
    %c0 = arith.constant 0 : index
    %c0_0 = arith.constant 0 : index
    %c0_1 = arith.constant 0 : index
    %c0_2 = arith.constant 0 : index
    %c0_3 = arith.constant 0 : index
    %0 = vector.load %arg3[%c0, %c0_0, %c0_1, %c0_2, %c0_3] : memref<1x1x9x8x12xbf16, #tpu.memory_space<vmem>>, vector<1x1x8x8x12xbf16>
    %1 = vector.shape_cast %0 : vector<1x1x8x8x12xbf16> to vector<8x8x12xbf16>
    %2 = vector.shape_cast %1 : vector<8x8x12xbf16> to vector<64x12xbf16>
    %c0_4 = arith.constant 0 : index
    %c0_5 = arith.constant 0 : index
    %c0_6 = arith.constant 0 : index
    %c0_7 = arith.constant 0 : index
    %c0_8 = arith.constant 0 : index
    %3 = vector.load %arg4[%c0_4, %c0_5, %c0_6, %c0_7, %c0_8] : memref<1x1x9x8x12xbf16, #tpu.memory_space<vmem>>, vector<1x1x8x8x12xbf16>
    %4 = vector.shape_cast %3 : vector<1x1x8x8x12xbf16> to vector<8x8x12xbf16>
    %5 = vector.shape_cast %4 : vector<8x8x12xbf16> to vector<64x12xbf16>
    %c0_9 = arith.constant 0 : index
    %c0_10 = arith.constant 0 : index
    %c1 = arith.constant 1 : index
    %c0_11 = arith.constant 0 : index
    %c0_12 = arith.constant 0 : index
    %6 = vector.load %arg3[%c0_9, %c0_10, %c1, %c0_11, %c0_12] : memref<1x1x9x8x12xbf16, #tpu.memory_space<vmem>>, vector<1x1x8x8x12xbf16>
    %7 = vector.shape_cast %6 : vector<1x1x8x8x12xbf16> to vector<8x8x12xbf16>
    %8 = vector.shape_cast %7 : vector<8x8x12xbf16> to vector<64x12xbf16>
    %c0_13 = arith.constant 0 : index
    %c0_14 = arith.constant 0 : index
    %c0_15 = arith.constant 0 : index
    %9 = vector.load %arg5[%c0_13, %c0_14, %c0_15] : memref<3x12x128xbf16, #tpu.memory_space<vmem>>, vector<1x12x128xbf16>
    %10 = vector.shape_cast %9 : vector<1x12x128xbf16> to vector<12x128xbf16>
    %cst = arith.constant dense<0.000000e+00> : vector<64x128xf32>
    %11 = tpu.matmul %2, %10, %cst {dimension_numbers = #tpu.dot_dimension_numbers<[1], [0], [0], [1], [0, 0, 1, 1], [], []>} : vector<64x12xbf16>, vector<12x128xbf16>, vector<64x128xf32> -> vector<64x128xf32>
    %c1_16 = arith.constant 1 : index
    %c0_17 = arith.constant 0 : index
    %c0_18 = arith.constant 0 : index
    %12 = vector.load %arg5[%c1_16, %c0_17, %c0_18] : memref<3x12x128xbf16, #tpu.memory_space<vmem>>, vector<1x12x128xbf16>
    %13 = vector.shape_cast %12 : vector<1x12x128xbf16> to vector<12x128xbf16>
    %cst_19 = arith.constant dense<0.000000e+00> : vector<64x128xf32>
    %14 = tpu.matmul %5, %13, %cst_19 {dimension_numbers = #tpu.dot_dimension_numbers<[1], [0], [0], [1], [0, 0, 1, 1], [], []>} : vector<64x12xbf16>, vector<12x128xbf16>, vector<64x128xf32> -> vector<64x128xf32>
    %15 = arith.addf %11, %14 : vector<64x128xf32>
    %c2 = arith.constant 2 : index
    %c0_20 = arith.constant 0 : index
    %c0_21 = arith.constant 0 : index
    %16 = vector.load %arg5[%c2, %c0_20, %c0_21] : memref<3x12x128xbf16, #tpu.memory_space<vmem>>, vector<1x12x128xbf16>
    %17 = vector.shape_cast %16 : vector<1x12x128xbf16> to vector<12x128xbf16>
    %cst_22 = arith.constant dense<0.000000e+00> : vector<64x128xf32>
    %18 = tpu.matmul %8, %17, %cst_22 {dimension_numbers = #tpu.dot_dimension_numbers<[1], [0], [0], [1], [0, 0, 1, 1], [], []>} : vector<64x12xbf16>, vector<12x128xbf16>, vector<64x128xf32> -> vector<64x128xf32>
    %19 = arith.addf %15, %18 : vector<64x128xf32>
    %c0_23 = arith.constant 0 : index
    %c0_24 = arith.constant 0 : index
    %20 = vector.load %arg6[%c0_23, %c0_24] : memref<1x128xf32, #tpu.memory_space<vmem>>, vector<1x128xf32>
    %21 = vector.broadcast %20 : vector<1x128xf32> to vector<64x128xf32>
    %22 = arith.addf %19, %21 : vector<64x128xf32>
    %c0_25 = arith.constant 0 : index
    %c0_26 = arith.constant 0 : index
    %c0_27 = arith.constant 0 : index
    %c0_28 = arith.constant 0 : index
    %23 = vector.load %arg7[%c0_25, %c0_26, %c0_27, %c0_28] : memref<1x1x64x128xf32, #tpu.memory_space<vmem>>, vector<1x1x64x128xf32>
    %24 = vector.shape_cast %23 : vector<1x1x64x128xf32> to vector<64x128xf32>
    %25 = vector.shape_cast %22 : vector<64x128xf32> to vector<1x1x64x128xf32>
    tpu.vector_store %arg7[%c0_25, %c0_26, %c0_27, %c0_28], %25 {strides = array<i32>} : memref<1x1x64x128xf32, #tpu.memory_space<vmem>>, vector<1x1x64x128xf32>,
    return
  }
  func.func @transform_0(%arg0: i32, %arg1: i32, %arg2: i32) -> (i32, i32, i32, i32, i32) {
    %c0_i32 = arith.constant 0 : i32
    %c0_i32_0 = arith.constant 0 : i32
    %c0_i32_1 = arith.constant 0 : i32
    %c0_i32_2 = arith.constant 0 : i32
    return %arg1, %arg2, %c0_i32, %c0_i32_0, %c0_i32_1 : i32, i32, i32, i32, i32
  }
  func.func @transform_1(%arg0: i32, %arg1: i32, %arg2: i32) -> (i32, i32, i32, i32, i32) {
    %c0_i32 = arith.constant 0 : i32
    %c0_i32_0 = arith.constant 0 : i32
    %c0_i32_1 = arith.constant 0 : i32
    %c0_i32_2 = arith.constant 0 : i32
    return %arg1, %arg2, %c0_i32, %c0_i32_0, %c0_i32_1 : i32, i32, i32, i32, i32
  }
  func.func @transform_2(%arg0: i32, %arg1: i32, %arg2: i32) -> (i32, i32, i32) {
    %c0_i32 = arith.constant 0 : i32
    %c0_i32_0 = arith.constant 0 : i32
    %c0_i32_1 = arith.constant 0 : i32
    %c0_i32_2 = arith.constant 0 : i32
    return %c0_i32, %c0_i32_0, %c0_i32_1 : i32, i32, i32
  }
  func.func @transform_3(%arg0: i32, %arg1: i32, %arg2: i32) -> (i32, i32) {
    %c0_i32 = arith.constant 0 : i32
    %c0_i32_0 = arith.constant 0 : i32
    %c0_i32_1 = arith.constant 0 : i32
    return %c0_i32, %c0_i32_0 : i32, i32
  }
  func.func @transform_4(%arg0: i32, %arg1: i32, %arg2: i32) -> (i32, i32, i32, i32) {
    %c0_i32 = arith.constant 0 : i32
    %c0_i32_0 = arith.constant 0 : i32
    return %arg1, %arg2, %c0_i32, %arg0 : i32, i32, i32, i32
  }
}

module attributes {stable_mosaic.version = 11 : i64} {
  func.func @kernel(%arg0: i32, %arg1: i32, %arg2: i32, %arg3: memref<1x1x9x8x12xbf16, #tpu.memory_space<vmem>>, %arg4: memref<1x1x9x8x12xbf16, #tpu.memory_space<vmem>>, %arg5: memref<3x12x128xbf16, #tpu.memory_space<vmem>>, %arg6: memref<1x128xf32, #tpu.memory_space<vmem>>, %arg7: memref<1x1x64x128xf32, #tpu.memory_space<vmem>>) attributes {dimension_semantics = [#tpu.dimension_semantics<parallel>, #tpu.dimension_semantics<parallel>, #tpu.dimension_semantics<parallel>], iteration_bounds = array<i64: 1, 2, 1>, scalar_prefetch = 0 : i64, scratch_operands = 0 : i64, tpu.core_type = #tpu.core_type<tc>, window_params = [{transform_indices = @transform_0, window_bounds = array<i64: 1, 1, 9, 8, 12>}, {transform_indices = @transform_1, window_bounds = array<i64: 1, 1, 9, 8, 12>}, {transform_indices = @transform_2, window_bounds = array<i64: 3, 12, 128>}, {transform_indices = @transform_3, window_bounds = array<i64: 1, 128>}, {transform_indices = @transform_4, window_bounds = array<i64: 1, 1, 64, 128>}]} {
    %c0 = arith.constant 0 : index
    %c0_0 = arith.constant 0 : index
    %c0_1 = arith.constant 0 : index
    %c0_2 = arith.constant 0 : index
    %c0_3 = arith.constant 0 : index
    %0 = vector.load %arg3[%c0, %c0_0, %c0_1, %c0_2, %c0_3] : memref<1x1x9x8x12xbf16, #tpu.memory_space<vmem>>, vector<1x1x8x8x12xbf16>
    %1 = vector.shape_cast %0 : vector<1x1x8x8x12xbf16> to vector<8x8x12xbf16>
    %2 = vector.shape_cast %1 : vector<8x8x12xbf16> to vector<64x12xbf16>
    %c0_4 = arith.constant 0 : index
    %c0_5 = arith.constant 0 : index
    %c0_6 = arith.constant 0 : index
    %c0_7 = arith.constant 0 : index
    %c0_8 = arith.constant 0 : index
    %3 = vector.load %arg4[%c0_4, %c0_5, %c0_6, %c0_7, %c0_8] : memref<1x1x9x8x12xbf16, #tpu.memory_space<vmem>>, vector<1x1x8x8x12xbf16>
    %4 = vector.shape_cast %3 : vector<1x1x8x8x12xbf16> to vector<8x8x12xbf16>
    %5 = vector.shape_cast %4 : vector<8x8x12xbf16> to vector<64x12xbf16>
    %c0_9 = arith.constant 0 : index
    %c0_10 = arith.constant 0 : index
    %c1 = arith.constant 1 : index
    %c0_11 = arith.constant 0 : index
    %c0_12 = arith.constant 0 : index
    %6 = vector.load %arg3[%c0_9, %c0_10, %c1, %c0_11, %c0_12] : memref<1x1x9x8x12xbf16, #tpu.memory_space<vmem>>, vector<1x1x8x8x12xbf16>
    %7 = vector.shape_cast %6 : vector<1x1x8x8x12xbf16> to vector<8x8x12xbf16>
    %8 = vector.shape_cast %7 : vector<8x8x12xbf16> to vector<64x12xbf16>
    %c0_13 = arith.constant 0 : index
    %c0_14 = arith.constant 0 : index
    %c0_15 = arith.constant 0 : index
    %9 = vector.load %arg5[%c0_13, %c0_14, %c0_15] : memref<3x12x128xbf16, #tpu.memory_space<vmem>>, vector<1x12x128xbf16>
    %10 = vector.shape_cast %9 : vector<1x12x128xbf16> to vector<12x128xbf16>
    %cst = arith.constant dense<0.000000e+00> : vector<64x128xf32>
    %11 = tpu.matmul %2, %10, %cst {dimension_numbers = #tpu.dot_dimension_numbers<[1], [0], [0], [1], [0, 0, 1, 1], [], []>} : vector<64x12xbf16>, vector<12x128xbf16>, vector<64x128xf32> -> vector<64x128xf32>
    %c1_16 = arith.constant 1 : index
    %c0_17 = arith.constant 0 : index
    %c0_18 = arith.constant 0 : index
    %12 = vector.load %arg5[%c1_16, %c0_17, %c0_18] : memref<3x12x128xbf16, #tpu.memory_space<vmem>>, vector<1x12x128xbf16>
    %13 = vector.shape_cast %12 : vector<1x12x128xbf16> to vector<12x128xbf16>
    %cst_19 = arith.constant dense<0.000000e+00> : vector<64x128xf32>
    %14 = tpu.matmul %5, %13, %cst_19 {dimension_numbers = #tpu.dot_dimension_numbers<[1], [0], [0], [1], [0, 0, 1, 1], [], []>} : vector<64x12xbf16>, vector<12x128xbf16>, vector<64x128xf32> -> vector<64x128xf32>
    %15 = arith.addf %11, %14 : vector<64x128xf32>
    %c2 = arith.constant 2 : index
    %c0_20 = arith.constant 0 : index
    %c0_21 = arith.constant 0 : index
    %16 = vector.load %arg5[%c2, %c0_20, %c0_21] : memref<3x12x128xbf16, #tpu.memory_space<vmem>>, vector<1x12x128xbf16>
    %17 = vector.shape_cast %16 : vector<1x12x128xbf16> to vector<12x128xbf16>
    %cst_22 = arith.constant dense<0.000000e+00> : vector<64x128xf32>
    %18 = tpu.matmul %8, %17, %cst_22 {dimension_numbers = #tpu.dot_dimension_numbers<[1], [0], [0], [1], [0, 0, 1, 1], [], []>} : vector<64x12xbf16>, vector<12x128xbf16>, vector<64x128xf32> -> vector<64x128xf32>
    %19 = arith.addf %15, %18 : vector<64x128xf32>
    %c0_23 = arith.constant 0 : index
    %c0_24 = arith.constant 0 : index
    %20 = vector.load %arg6[%c0_23, %c0_24] : memref<1x128xf32, #tpu.memory_space<vmem>>, vector<1x128xf32>
    %21 = vector.broadcast %20 : vector<1x128xf32> to vector<64x128xf32>
    %22 = arith.addf %19, %21 : vector<64x128xf32>
    %c0_25 = arith.constant 0 : index
    %c0_26 = arith.constant 0 : index
    %c0_27 = arith.constant 0 : index
    %c0_28 = arith.constant 0 : index
    %23 = vector.load %arg7[%c0_25, %c0_26, %c0_27, %c0_28] : memref<1x1x64x128xf32, #tpu.memory_space<vmem>>, vector<1x1x64x128xf32>
    %24 = vector.shape_cast %23 : vector<1x1x64x128xf32> to vector<64x128xf32>
    %25 = vector.shape_cast %22 : vector<64x128xf32> to vector<1x1x64x128xf32>
    tpu.vector_store %arg7[%c0_25, %c0_26, %c0_27, %c0_28], %25 {strides = array<i32>} : memref<1x1x64x128xf32, #tpu.memory_space<vmem>>, vector<1x1x64x128xf32>,
    return
  }
  func.func @transform_0(%arg0: i32, %arg1: i32, %arg2: i32) -> (i32, i32, i32, i32, i32) {
    %c0_i32 = arith.constant 0 : i32
    %c0_i32_0 = arith.constant 0 : i32
    %c0_i32_1 = arith.constant 0 : i32
    %c0_i32_2 = arith.constant 0 : i32
    return %arg1, %arg2, %c0_i32, %c0_i32_0, %c0_i32_1 : i32, i32, i32, i32, i32
  }
  func.func @transform_1(%arg0: i32, %arg1: i32, %arg2: i32) -> (i32, i32, i32, i32, i32) {
    %c0_i32 = arith.constant 0 : i32
    %c0_i32_0 = arith.constant 0 : i32
    %c0_i32_1 = arith.constant 0 : i32
    %c0_i32_2 = arith.constant 0 : i32
    return %arg1, %arg2, %c0_i32, %c0_i32_0, %c0_i32_1 : i32, i32, i32, i32, i32
  }
  func.func @transform_2(%arg0: i32, %arg1: i32, %arg2: i32) -> (i32, i32, i32) {
    %c0_i32 = arith.constant 0 : i32
    %c0_i32_0 = arith.constant 0 : i32
    %c0_i32_1 = arith.constant 0 : i32
    return %c0_i32, %c0_i32_0, %arg0 : i32, i32, i32
  }
  func.func @transform_3(%arg0: i32, %arg1: i32, %arg2: i32) -> (i32, i32) {
    %c0_i32 = arith.constant 0 : i32
    %c0_i32_0 = arith.constant 0 : i32
    return %c0_i32, %arg0 : i32, i32
  }
  func.func @transform_4(%arg0: i32, %arg1: i32, %arg2: i32) -> (i32, i32, i32, i32) {
    %c0_i32 = arith.constant 0 : i32
    %c0_i32_0 = arith.constant 0 : i32
    return %arg1, %arg2, %c0_i32, %arg0 : i32, i32, i32, i32
  }
}

</mosaic_0001>

<bundles_post_ra>
// kernel: tpu_custom_call.1
= control target key start
LH: loop header
LB: loop body
LE: loop exit
PB: predicated region body
PF: predicated region fallthrough
CT: control target
= control target key end

     0   :  { %s1566_s0 = inlined_call_operand.hbm [shape: bf16[2,1,9,8,12], index: 0, kind: input, shape index: {}]   ;;  %s1567_s1 = inlined_call_operand.hbm [shape: bf16[2,1,9,8,12], index: 1, kind: input, shape index: {}]   ;;  %s1568_s2 = inlined_call_operand.hbm [shape: bf16[3,12,128], index: 2, kind: input, shape index: {}]   ;;  %s1569_s3 = inlined_call_operand.vmem [shape: f32[1,128], index: 3, kind: input, shape index: {}]   ;;  %s1570_s4 = inlined_call_operand.hbm [shape: f32[2,1,64,128], index: 4, kind: output, shape index: {}]  }
   0x1   :  { %1580 = sst [smem:[#allocation14_spill]] %s1566_s0 }
   0x2   :  { %1581 = sst [smem:[#allocation15_spill]] %s1568_s2 }
   0x3   :  { %9 = vsyncpa [#allocation3], 0 }
   0x4   :  { %11 = vsyncpa [#allocation3 + $0x1], 0 }
   0x5   :  { %12 = vsyncpa [#allocation6], 0 }
   0x6   :  { %14 = vsyncpa [#allocation6 + $0x1], 0 }
   0x7   :  { %15 = vsyncpa [#allocation4], 0 }
   0x8   :  { %17 = vsyncpa [#allocation4 + $0x1], 0  ;;  %s1260_s15 = smov 0   ;;  %s1262_s16 = smov 0  }
   0x9   :  { %s1264_s17 = smov 0   ;;  %s1266_s18 = smov 0  }
   0xa   :  { %s1268_s19 = smov 0   ;;  %s1270_s20 = smov 0  }
   0xb LB: > { %s1291_s21 = sadd.s32 4294967295, %s1225_s20   ;;  %s827_s22 = sadd.s32 4294967294, %s1225_s20   ;;  %s1225_s20 = sphi %s1270_s20, %s23_s20   ;;  %s1221_s19 = sphi %s1268_s19, %s1607_s19   ;;  %s1217_s18 = sphi %s1266_s18, %s1606_s18   ;;  %s1213_s17 = sphi %s1264_s17, %s1605_s17   ;;  %s1209_s16 = sphi %s1262_s16, %s1604_s16   ;;  %s1205_s15 = sphi %s1260_s15, %s1603_s15  }
   0xc   : > { %p64_p0 = scmp.ne.s32.totalorder %s1209_s16, %s1205_s15  ;;  %p1571_p1 = scmp.eq.s32.totalorder %s1291_s21, 0 }
   0xd   : > { %p168_p3 = scmp.eq.s32.totalorder %s827_s22, 1  ;;  %p828_p5 = scmp.ge.s32.totalorder %s1225_s20, 1 }
   0xe   : > { %p1300_p4 = por %p1571_p1, %p64_p0  ;;  %p175_p7 = scmp.lt.s32.totalorder %s1225_s20, 3 }
   0xf   : > { %p1305_p6 = por %p168_p3, %p64_p0  ;;  %s1227_s26 = smov [#allocation7]  }
  0x10   : > { %s1582_s23 = scalar_select %p1300_p4, 1, 0 }
  0x11   : > { %s1583_s24 = scalar_select %p1305_p6, 1, 0 }
  0x12   : > { %p1310_p8 = pnand %p828_p5, %p175_p7  ;;  %s187_s27 = sshll.u32 %s1227_s26, 4  ;;  %s188_s27 = int_to_ptr.vmem [resolvable:$true] %s187_s27 }
  0x13   : > { %s38_s29 = sadd.s32 1, %s1221_s19  ;;  %s1586_s2 = sld [smem:[#allocation15_spill]] }
  0x14   : > { %s1584_s25 = scalar_select %p1310_p8, 1, 0 }
  0x15   : > { %p960_p9 = pneg %p1310_p8 }
  0x17   : > { %p1319_p11 = pnand %p960_p9, %p1571_p1 }
  0x19   : > { %s1047_s6 = scalar_lea.hbm %s1586_s2, 384  ;;  %p1049_p13 = pneg %p1319_p11 }
  0x1a   : > { %p1048_p12 = scmp.ne.s32.totalorder %s1586_s2, %s1047_s6  ;;  %p1054_p5 = scmp.lt.u32.totalorder %s1047_s6, %s1586_s2 }
  0x1c   : > { %p1050_p0 = pnand %p1049_p13, %p1048_p12 }
  0x1e   : > { %p1051_p3 = pneg %p1050_p0 }
  0x20   : > { %p1056_p7 = pnand %p1054_p5, %p1051_p3 }
  0x22   : > { %1059 = shalt.err (!%p1056_p7)
}
  0x23   : > { %s1060_s11 = scalar_lea.vmem %s188_s27, 384  ;;  %p1068_p2 = scmp.lt.s32.totalorder %s188_s27, %s188_s27 }
  0x24   : > { %p1061_p9 = scmp.ne.s32.totalorder %s188_s27, %s1060_s11  ;;  %p1069_p6 = scmp.lt.s32.totalorder %s1060_s11, %s1060_s11 }
  0x26   : > { %p1063_p10 = pnand %p1061_p9, %p1049_p13  ;;  %p1070_p4 = por %p1069_p6, %p1068_p2 }
  0x28   : > { %p1064_p1 = pneg %p1063_p10 }
  0x2a   : > { %p1071_p8 = pnand %p1070_p4, %p1064_p1 }
  0x2c   : > { %1074 = shalt.err (!%p1071_p8)
}
  0x2d   : > { %s1575_s12 = smov 64   ;;  %s1577_s13 = smov 4  }
  0x2e   : > { %963 = dma.hbm_to_vmem [thread:$0]  (!%p1319_p11), %s1586_s2, 384, %s188_s27, [#allocation6], %s1575_s12, %s1575_s12, %s1577_s13  }
  0x2f   : > { %p40_p1 = scmp.ge.s32.totalorder %s38_s29, 2  ;;  %s51_s26 = sadd.s32 1, %s1213_s17 }
  0x30   : > { %p58_p2 = scmp.ne.s32.totalorder %s1213_s17, %s1209_s16  ;;  %p59_p4 = scmp.eq.s32.totalorder %s1225_s20, 0 }
  0x31   : > { %s1609_s29 = smov (%p40_p1, %s38_s29), 0  ;;  %p1588_p8 = scmp.eq.s32.totalorder %s1291_s21, 1 }
  0x32   : > { %1587 = sst [smem:[#allocation13_spill]] %s1609_s29  ;;  %p60_p6 = por %p59_p4, %p58_p2 }
  0x33   : > { %p1351_p10 = por %p1588_p8, %p58_p2  ;;  %s46_s30 = ssub.s32 %s1221_s19, %s1609_s29 }
  0x34   : > { %p976_p12 = scmp.lt.s32.totalorder %s1225_s20, 2  ;;  %p49_p13 = scmp.eq.s32.totalorder %s46_s30, 0 }
  0x35   : > { %s204_s5 = sand.u32 1, %s1213_s17   ;;  %s1574_s7 = smul.u32 576, %s1221_s19 }
  0x36   : > { %s1359_s27 = smul.u32 36, %s204_s5  ;;  %p1366_p11 = pnand %p976_p12, %p60_p6 }
  0x37   : > { %s1362_s6 = scalar_select %p49_p13, %s1213_s17, %s51_s26  }
  0x38   : > { %s208_s8 = scalar_lea.vmem [#allocation2], %s1359_s27  ;;  %s1591_s0 = sld [smem:[#allocation14_spill]] }
  0x39   : > { %s217_s9 = sshll.u32 %s208_s8, 4  ;;  %s1380_s30 = scalar_lea.sflag [#allocation3], %s204_s5  ;;  %s1377_s9 = int_to_ptr.vmem [resolvable:$true] %s217_s9 }
  0x3a   : > { %p1077_p3 = pneg %p1366_p11 }
  0x3e   : > { %s1375_s22 = scalar_lea.hbm %s1591_s0, %s1574_s7  ;;  %s1080_s7 = scalar_lea.hbm %s1591_s0, 1152 }
  0x3f   : > { %s1075_s8 = scalar_lea.hbm %s1375_s22, 576  ;;  %p1081_p9 = scmp.lt.u32.totalorder %s1375_s22, %s1591_s0 }
  0x40   : > { %p1076_p0 = scmp.ne.s32.totalorder %s1375_s22, %s1075_s8  ;;  %p1082_p1 = scmp.lt.u32.totalorder %s1080_s7, %s1075_s8 }
  0x41   : > { %p1084_p4 = scmp.lt.u32.totalorder %s1075_s8, %s1375_s22 }
  0x42   : > { %p1078_p5 = pnand %p1077_p3, %p1076_p0  ;;  %p1083_p2 = por %p1082_p1, %p1081_p9 }
  0x44   : > { %p1079_p7 = pneg %p1078_p5  ;;  %p1085_p6 = por %p1084_p4, %p1083_p2 }
  0x46   : > { %p1086_p8 = pnand %p1085_p6, %p1079_p7 }
  0x48   : > { %1089 = shalt.err (!%p1086_p8)
}
  0x49   : > { %s1090_s5 = scalar_lea.vmem %s1377_s9, 576  ;;  %s1230_s11 = smov [#allocation2]  }
  0x4a   : > { %p1091_p12 = scmp.ne.s32.totalorder %s1377_s9, %s1090_s5  ;;  %s1095_s14 = sshll.u32 %s1230_s11, 4  ;;  %s1096_s14 = int_to_ptr.vmem [resolvable:$false] %s1095_s14 }
  0x4b   : > { %s1097_s12 = scalar_lea.vmem %s1096_s14, 1152  ;;  %p1098_p5 = scmp.lt.s32.totalorder %s1377_s9, %s1096_s14 }
  0x4c   : > { %p1093_p13 = pnand %p1091_p12, %p1077_p3  ;;  %p1099_p9 = scmp.lt.s32.totalorder %s1097_s12, %s1090_s5 }
  0x4e   : > { %p1094_p0 = pneg %p1093_p13  ;;  %p1100_p1 = por %p1099_p9, %p1098_p5 }
  0x50   : > { %p1101_p2 = pnand %p1100_p1, %p1094_p0 }
  0x52   : > { %1104 = shalt.err (!%p1101_p2)
}
  0x53   : > { %s1592_s13 = smov 4   ;;  %s1593_s7 = smov 64  }
  0x54   : > { %967 = dma.hbm_to_vmem [thread:$0]  (!%p1366_p11), %s1375_s22, 576, %s1377_s9, %s1380_s30, %s1593_s7, %s1593_s7, %s1592_s13  }
  0x55   : > { %s1594_s8 = smul.u32 576, %s1221_s19  ;;  %s231_s12 = scalar_lea.vmem [#allocation5], %s1359_s27 }
  0x56   : > { %s240_s26 = sshll.u32 %s231_s12, 4  ;;  %s1595_s0 = sand.u32 1, %s1225_s20   ;;  %s1419_s26 = int_to_ptr.vmem [resolvable:$true] %s240_s26 }
  0x57   : > { %s1416_s5 = scalar_lea.hbm %s1567_s1, %s1594_s8  ;;  %s1423_s2 = scalar_lea.sflag [#allocation6], %s1595_s0 }
  0x58   : > { %s1105_s29 = scalar_lea.hbm %s1416_s5, 576  ;;  %s1110_s30 = scalar_lea.hbm %s1567_s1, 1152 }
  0x59   : > { %p1106_p7 = scmp.ne.s32.totalorder %s1416_s5, %s1105_s29  ;;  %p1111_p8 = scmp.lt.u32.totalorder %s1416_s5, %s1567_s1 }
  0x5a   : > { %p1112_p12 = scmp.lt.u32.totalorder %s1110_s30, %s1105_s29  ;;  %p1114_p0 = scmp.lt.u32.totalorder %s1105_s29, %s1416_s5 }
  0x5b   : > { %p1108_p4 = pnand %p1106_p7, %p1077_p3 }
  0x5c   : > { %p1113_p13 = por %p1112_p12, %p1111_p8 }
  0x5d   : > { %p1109_p6 = pneg %p1108_p4 }
  0x5e   : > { %p1115_p5 = por %p1114_p0, %p1113_p13 }
  0x60   : > { %p1116_p9 = pnand %p1115_p5, %p1109_p6 }
  0x62   : > { %1119 = shalt.err (!%p1116_p9)
}
  0x63   : > { %s1120_s0 = scalar_lea.vmem %s1419_s26, 576  ;;  %s1231_s27 = smov [#allocation5]  }
  0x64   : > { %p1121_p1 = scmp.ne.s32.totalorder %s1419_s26, %s1120_s0  ;;  %s1125_s14 = sshll.u32 %s1231_s27, 4  ;;  %s1126_s14 = int_to_ptr.vmem [resolvable:$false] %s1125_s14 }
  0x65   : > { %s1127_s12 = scalar_lea.vmem %s1126_s14, 1152  ;;  %p1128_p4 = scmp.lt.s32.totalorder %s1419_s26, %s1126_s14 }
  0x66   : > { %p1123_p2 = pnand %p1121_p1, %p1077_p3  ;;  %p1129_p8 = scmp.lt.s32.totalorder %s1127_s12, %s1120_s0 }
  0x68   : > { %p1124_p7 = pneg %p1123_p2  ;;  %p1130_p12 = por %p1129_p8, %p1128_p4 }
  0x6a   : > { %p1131_p13 = pnand %p1130_p12, %p1124_p7 }
  0x6c   : > { %1134 = shalt.err (!%p1131_p13)
}
  0x6d   : > { %970 = dma.hbm_to_vmem [thread:$0]  (!%p1366_p11), %s1416_s5, 576, %s1419_s26, %s1423_s2, %s1593_s7, %s1593_s7, %s1592_s13  }
  0x6e   : > { %p1596_p3 = scmp.ne.s32.totalorder %s1584_s25, 0 }
  0x6f   : > { %s1455_s29 = sand.u32 (!%p1596_p3), 1, %s1209_s16   ;;  %p1597_p6 = scmp.ne.s32.totalorder (!%p1596_p3), %s1582_s23, 0 }
  0x70   : > { %252 = sbr.rel (%p1596_p3) target bundleno = 385 (0x181), region = 36  ;;  %s255_s22 = scalar_lea.sflag (!%p1596_p3), [#allocation3], %s1455_s29 }
  0x71   : > { %s949_s9 = smul.u32 (!%p1596_p3), 36, %s1455_s29 }
  0x73   : > { %s1459_s30 = scalar_lea.vmem (!%p1596_p3), [#allocation2], %s949_s9 }
  0x77   : > { %1188 = dma.done.wait (%p1597_p6), %s255_s22, 576  }
  0x78   : > { %1190 = vsyncadd (%p1597_p6), %s255_s22, 4294966720  ;;  %s263_s2 = sand.u32 1, %s1291_s21   ;;  %s1466_s10 = scalar_lea.vmem [#allocation5], %s949_s9 }
  0x79   : > { %s264_s25 = scalar_lea.sflag [#allocation6], %s263_s2 }
  0x7a   : > { %1192 = dma.done.wait (%p1597_p6), %s264_s25, 576  }
  0x7b   : > { %1194 = vsyncadd (%p1597_p6), %s264_s25, 4294966720  ;;  %p1598_p11 = scmp.eq.s32.totalorder %s1291_s21, 0 }
  0x7d   : > { %1196 = dma.done.wait (%p1598_p11), [#allocation6], 384   ;;  %p1599_p0 = pmov %p1598_p11 }
  0x7e   : > { %vm370_vm0 = vcmask 1045504   ;;  %vm357_vm1 = vcmask 97280   ;;  %v1032_v0 = vld [vmem:[#allocation7 + $0x8] sm:$0x3f]   ;;  %v1033_v1 = vld [vmem:[#allocation7] sm:$0x3f]  }
  0x7f   : > { %1198 = vsyncadd (%p1599_p0), [#allocation6], 4294966912  ;;  %941 = vmatprep.subr.msk.bf16.mxu1 %vm370_vm0, %v1032_v0  ;;  %v372_v2 = vsel %vm370_vm0, %v1032_v0, 0  ;;  %v1034_v3 = vld [vmem:[%s1466_s10] sm:$0xff]   ;;  %942 = vmatprep.subr.msk.bf16.mxu0 %vm370_vm0, %v1033_v1  ;;  %v477_v4 = vsel %vm370_vm0, %v1033_v1, 0  ;;  %v1035_v5 = vld [vmem:[%s1459_s30] sm:$0xff]  }
  0x80   : > { %894 = vmatpush3.bf16.msra.mxu1 %v372_v2  ;;  %904 = vmatpush3.bf16.msra.mxu0 %v477_v4  ;;  %v1036_v6 = vld [vmem:[%s1466_s10 + $0x8] sm:$0xff]   ;;  %v1037_v7 = vld [vmem:[%s1459_s30 + $0x8] sm:$0xff]   ;;  %v1038_v8 = vld [vmem:[#allocation7 + $0x10] sm:$0x3f]   ;;  %s835_s21 = sshll.u32 %s1455_s29, 6  ;;  %s877_s5 = sshll.u32 %s1217_s18, 10 }
  0x81   : > { %895 = vmatprep.mubr.msk.bf16.mxu1 %vm357_vm1, %v1034_v3  ;;  %905 = vmatprep.mubr.msk.bf16.mxu0 %vm357_vm1, %v1035_v5  ;;  %v1039_v9 = vld [vmem:[%s1466_s10 + $0x10] sm:$0xff]   ;;  %v585_v10 = vsel %vm370_vm0, %v1038_v8, 0  ;;  %v1041_v11 = vld [vmem:[%s1459_s30 + $0x4] sm:$0xff]   ;;  %v1043_v13 = vld [vmem:[%s1459_s30 + $0x10] sm:$0xff]   ;;  %s300_s13 = scalar_lea.vmem [#allocation8], %s835_s21  ;;  %s1517_s0 = scalar_lea.hbm %s1570_s4, %s877_s5 }
  0x82   : > { %943 = vmatprep.subr.msk.bf16.mxu1 %vm370_vm0, %v1033_v1  ;;  %944 = vmatprep.subr.msk.bf16.mxu0 %vm370_vm0, %v1038_v8  ;;  %v1040_v12 = vld [vmem:[%s1466_s10 + $0x18] sm:$0xff]   ;;  %v1042_v14 = vld [vmem:[%s1459_s30 + $0xc] sm:$0xff]   ;;  %v1044_v15 = vld [vmem:[%s1459_s30 + $0x14] sm:$0xff]   ;;  %s700_s7 = sshll.u32 %s300_s13, 4  ;;  %s684_s18 = scalar_lea.sflag [#allocation4], %s1455_s29  ;;  %s1512_s7 = int_to_ptr.vmem [resolvable:$true] %s700_s7 }
  0x83   : > { %896 = vmatmul.mubr.msk.bf16.vlgmr.msra.gmra.mrb[0].mxu1 %vm357_vm1, %v1036_v6  ;;  %906 = vmatmul.mubr.msk.bf16.vlgmr.msra.gmra.mrb[0].mxu0 %vm357_vm1, %v1037_v7  ;;  %v1045_v16 = vld [vmem:[%s1459_s30 + $0x18] sm:$0xff]   ;;  %s1135_s27 = scalar_lea.vmem %s1512_s7, 1024  ;;  %s1232_s14 = smov [#allocation8]  }
  0x84   : > { %924 = vmatpush3.bf16.msra.mxu1 %v477_v4  ;;  %914 = vmatpush3.bf16.msra.mxu0 %v585_v10  ;;  %v1046_v17 = vld [vmem:[%s1459_s30 + $0x1c] sm:$0xff]   ;;  %p1136_p5 = scmp.ne.s32.totalorder %s1512_s7, %s1135_s27  ;;  %s1139_s12 = sshll.u32 %s1232_s14, 4  ;;  %s1140_s12 = int_to_ptr.vmem [resolvable:$false] %s1139_s12 }
  0x85   : > { %899 = vmatprep.mubr.msk.bf16.mxu1 %vm357_vm1, %v1039_v9  ;;  %915 = vmatprep.mubr.msk.bf16.mxu0 %vm357_vm1, %v1041_v11  ;;  %v871_v23 = vld [vmem:[%s1569_s3] ss:$0 sm:$0xff]  ;;  %s1141_s9 = scalar_lea.vmem %s1140_s12, 2048  ;;  %p1142_p2 = scmp.lt.s32.totalorder %s1512_s7, %s1140_s12 }
  0x86   : > { %p1137_p9 = pnand %p1136_p5, %p1351_p10  ;;  %p1143_p7 = scmp.lt.s32.totalorder %s1141_s9, %s1135_s27 }
  0x88   : > { %p1138_p1 = pneg %p1137_p9  ;;  %p1144_p4 = por %p1143_p7, %p1142_p2 }
  0x8a   : > { %p1145_p8 = pnand %p1144_p4, %p1138_p1 }
  0x8b   : > { %900 = vmatmul.mubr.msk.bf16.gmra.mrb[4].mxu1 %vm357_vm1, %v1040_v12 }
  0x8c   : > { %909 = vmatprep.mubr.msk.bf16.mxu1 %vm357_vm1, %v1043_v13 }
  0x8f   : > { %916 = vmatmul.mubr.msk.bf16.vlgmr.msra.gmra.mrb[0].mxu0 %vm357_vm1, %v1042_v14 }
  0x90   : > { %919 = vmatprep.mubr.msk.bf16.mxu0 %vm357_vm1, %v1044_v15 }
  0x97   : > { %910 = vmatmul.mubr.msk.bf16.vlgmr.msra.gmra.mrb[4].mxu1 %vm357_vm1, %v1045_v16  ;;  %920 = vmatmul.mubr.msk.bf16.gmra.mrb[4].mxu0 %vm357_vm1, %v1046_v17 }
 0x156   : > { %v897_v18 = vpop.f32.mrb[0].mxu1 }
 0x157   : > { %v408_v19 = vpop.f32.mrb[1].mxu1 }
 0x158   : > { %v898_v20 = vpop.f32.mrb[2].mxu1 }
 0x159   : > { %v411_v21 = vpop.f32.mrb[3].mxu1 }
 0x162   : > { %v917_v22 = vpop.f32.mrb[0].mxu0 }
 0x163   : > { %v925_v24 = vadd.f32 %v917_v22, %v897_v18  ;;  %v621_v25 = vpop.f32.mrb[1].mxu0 }
 0x164   : > { %v926_v26 = vadd.f32 %v621_v25, %v408_v19  ;;  %v918_v27 = vpop.f32.mrb[2].mxu0 }
 0x165   : > { %v669_v28 = vadd.f32 %v925_v24, %v871_v23  ;;  %v927_v29 = vadd.f32 %v918_v27, %v898_v20  ;;  %v624_v30 = vpop.f32.mrb[3].mxu0 }
 0x166   : > { %v667_v31 = vadd.f32 %v926_v26, %v871_v23  ;;  %v928_v32 = vadd.f32 %v624_v30, %v411_v21 }
 0x167   : > { %677 = vst [vmem:[%s300_s13 + $0x10] sm:$0xff] %v669_v28  ;;  %v670_v33 = vadd.f32 %v927_v29, %v871_v23 }
 0x168   : > { %675 = vst [vmem:[%s300_s13] sm:$0xff] %v667_v31  ;;  %v668_v34 = vadd.f32 %v928_v32, %v871_v23 }
 0x169   : > { %678 = vst [vmem:[%s300_s13 + $0x18] sm:$0xff] %v670_v33 }
 0x16a   : > { %v911_v35 = vpop.f32.mrb[4].mxu1  ;;  %676 = vst [vmem:[%s300_s13 + $0x8] sm:$0xff] %v668_v34  ;;  %v921_v36 = vpop.f32.mrb[4].mxu0 }
 0x16b   : > { %v529_v37 = vpop.f32.mrb[5].mxu1  ;;  %v929_v38 = vadd.f32 %v921_v36, %v911_v35  ;;  %v637_v39 = vpop.f32.mrb[5].mxu0 }
 0x16c   : > { %v912_v40 = vpop.f32.mrb[6].mxu1  ;;  %v930_v41 = vadd.f32 %v637_v39, %v529_v37  ;;  %v922_v42 = vpop.f32.mrb[6].mxu0 }
 0x16d   : > { %v532_v43 = vpop.f32.mrb[7].mxu1  ;;  %v673_v44 = vadd.f32 %v929_v38, %v871_v23  ;;  %v931_v45 = vadd.f32 %v922_v42, %v912_v40  ;;  %v640_v46 = vpop.f32.mrb[7].mxu0 }
 0x16e   : > { %v671_v47 = vadd.f32 %v930_v41, %v871_v23  ;;  %v932_v48 = vadd.f32 %v640_v46, %v532_v43 }
 0x16f   : > { %681 = vst [vmem:[%s300_s13 + $0x30] sm:$0xff] %v673_v44  ;;  %v674_v49 = vadd.f32 %v931_v45, %v871_v23 }
 0x170   : > { %679 = vst [vmem:[%s300_s13 + $0x20] sm:$0xff] %v671_v47  ;;  %v672_v50 = vadd.f32 %v932_v48, %v871_v23 }
 0x171   : > { %682 = vst [vmem:[%s300_s13 + $0x38] sm:$0xff] %v674_v49 }
 0x172   : > { %680 = vst [vmem:[%s300_s13 + $0x28] sm:$0xff] %v672_v50 }
 0x173   : > { %1148 = shalt.err (!%p1145_p8)
}
 0x174   : > { %s1149_s22 = scalar_lea.hbm %s1517_s0, 1024  ;;  %s1153_s25 = scalar_lea.hbm %s1570_s4, 2048 }
 0x175   : > { %p1150_p12 = scmp.ne.s32.totalorder %s1517_s0, %s1149_s22  ;;  %p1154_p6 = scmp.lt.u32.totalorder %s1517_s0, %s1570_s4 }
 0x176   : > { %p1155_p11 = scmp.lt.u32.totalorder %s1153_s25, %s1149_s22  ;;  %p1157_p5 = scmp.lt.u32.totalorder %s1149_s22, %s1517_s0 }
 0x177   : > { %p1151_p13 = pnand %p1150_p12, %p1351_p10 }
 0x178   : > { %p1156_p0 = por %p1155_p11, %p1154_p6 }
 0x179   : > { %p1152_p3 = pneg %p1151_p13 }
 0x17a   : > { %p1158_p9 = por %p1157_p5, %p1156_p0 }
 0x17c   : > { %p1159_p1 = pnand %p1158_p9, %p1152_p3 }
 0x17e   : > { %1162 = shalt.err (!%p1159_p1)
}
 0x17f   : > { %s1233_s23 = smov 128   ;;  %s1234_s26 = smov 8  }
 0x180   : > { %958 = dma.vmem_to_hbm [thread:$0]  (%p1351_p10), %s1512_s7, 1024, %s1517_s0, %s684_s18, %s1233_s23, %s1233_s23, %s1234_s26  }
 0x181 PF: > { %s715_s13 = sand.u32 1, %s1205_s15   ;;  %p1600_p2 = scmp.ne.s32.totalorder %s1583_s24, 0 }
 0x182   : > { %p1601_p7 = scmp.ge.s32.totalorder %s1225_s20, 2  ;;  %s716_s5 = scalar_lea.sflag [#allocation4], %s715_s13 }
 0x184   : > { %p972_p4 = pnand %p1601_p7, %p1600_p2 }
 0x186   : > { %1200 = dma.done.wait (!%p972_p4), %s716_s5, 1024  }
 0x187   : > { %1202 = vsyncadd (!%p972_p4), %s716_s5, 4294966272  ;;  %s23_s20 = sadd.s32 1, %s1225_s20   ;;  %s1602_s28 = sld [smem:[#allocation13_spill]] }
 0x188   : > { %p20_p8 = scmp.ge.s32.totalorder %s23_s20, 4   ;;  %s1603_s15 = smov %s1209_s16 }
 0x189   : > { %s1604_s16 = smov %s1213_s17  ;;  %s1605_s17 = smov %s1362_s6 }
 0x18a   : > { %s1606_s18 = smov %s1221_s19  ;;  %22 = sbr.rel (!%p20_p8) target bundleno = 11 (0xb), region = 101 }
 0x18d   : > { %s1607_s19 = smov %s1602_s28 }
 0x191   :  { %721 = vsyncpa [#allocation3], 1 }
 0x192   :  { %723 = vsyncpa [#allocation3 + $0x1], 1 }
 0x193   :  { %724 = vsyncpa [#allocation6], 1 }
 0x194   :  { %726 = vsyncpa [#allocation6 + $0x1], 1 }
 0x195   :  { %727 = vsyncpa [#allocation4], 1 }
 0x196   :  { %729 = vsyncpa [#allocation4 + $0x1], 1 }

// kernel: tpu_custom_call.1
= control target key start
LH: loop header
LB: loop body
LE: loop exit
PB: predicated region body
PF: predicated region fallthrough
CT: control target
= control target key end

     0   :  { %s1602_s0 = inlined_call_operand.hbm [shape: bf16[2,1,9,8,12], index: 0, kind: input, shape index: {}]   ;;  %s1603_s1 = inlined_call_operand.hbm [shape: bf16[2,1,9,8,12], index: 1, kind: input, shape index: {}]   ;;  %s1604_s2 = inlined_call_operand.hbm [shape: bf16[3,12,128], index: 2, kind: input, shape index: {}]   ;;  %s1605_s3 = inlined_call_operand.vmem [shape: f32[1,128], index: 3, kind: input, shape index: {}]   ;;  %s1606_s4 = inlined_call_operand.hbm [shape: f32[2,1,64,128], index: 4, kind: output, shape index: {}]  }
   0x1   :  { %1616 = sst [smem:[#allocation14_spill]] %s1602_s0 }
   0x2   :  { %1617 = sst [smem:[#allocation15_spill]] %s1604_s2 }
   0x3   :  { %9 = vsyncpa [#allocation3], 0 }
   0x4   :  { %11 = vsyncpa [#allocation3 + $0x1], 0 }
   0x5   :  { %12 = vsyncpa [#allocation6], 0 }
   0x6   :  { %14 = vsyncpa [#allocation6 + $0x1], 0 }
   0x7   :  { %15 = vsyncpa [#allocation4], 0 }
   0x8   :  { %17 = vsyncpa [#allocation4 + $0x1], 0  ;;  %s1296_s15 = smov 0   ;;  %s1298_s16 = smov 0  }
   0x9   :  { %s1300_s17 = smov 0   ;;  %s1302_s18 = smov 0  }
   0xa   :  { %s1304_s19 = smov 0   ;;  %s1306_s20 = smov 0  }
   0xb LB: > { %s1327_s21 = sadd.s32 4294967295, %s1261_s20   ;;  %s862_s22 = sadd.s32 4294967294, %s1261_s20   ;;  %s1261_s20 = sphi %s1306_s20, %s23_s20   ;;  %s1257_s19 = sphi %s1304_s19, %s1643_s19   ;;  %s1253_s18 = sphi %s1302_s18, %s1642_s18   ;;  %s1249_s17 = sphi %s1300_s17, %s1641_s17   ;;  %s1245_s16 = sphi %s1298_s16, %s1640_s16   ;;  %s1241_s15 = sphi %s1296_s15, %s1639_s15  }
   0xc   : > { %p64_p0 = scmp.ne.s32.totalorder %s1245_s16, %s1241_s15  ;;  %p1607_p1 = scmp.eq.s32.totalorder %s1327_s21, 0 }
   0xd   : > { %p178_p3 = scmp.eq.s32.totalorder %s862_s22, 1  ;;  %p863_p5 = scmp.ge.s32.totalorder %s1261_s20, 1 }
   0xe   : > { %p1336_p4 = por %p1607_p1, %p64_p0  ;;  %p185_p7 = scmp.lt.s32.totalorder %s1261_s20, 3 }
   0xf   : > { %p1341_p6 = por %p178_p3, %p64_p0  ;;  %s1263_s26 = smov [#allocation7]  }
  0x10   : > { %s1618_s23 = scalar_select %p1336_p4, 1, 0 }
  0x11   : > { %s1619_s24 = scalar_select %p1341_p6, 1, 0 }
  0x12   : > { %p1346_p8 = pnand %p863_p5, %p185_p7  ;;  %s199_s27 = sshll.u32 %s1263_s26, 4  ;;  %s200_s27 = int_to_ptr.vmem [resolvable:$true] %s199_s27 }
  0x13   : > { %s38_s29 = sadd.s32 1, %s1257_s19  ;;  %s1622_s2 = sld [smem:[#allocation15_spill]] }
  0x14   : > { %s1620_s25 = scalar_select %p1346_p8, 1, 0 }
  0x15   : > { %p996_p9 = pneg %p1346_p8 }
  0x17   : > { %p1355_p11 = pnand %p996_p9, %p1607_p1 }
  0x19   : > { %s1083_s6 = scalar_lea.hbm %s1622_s2, 384  ;;  %p1085_p13 = pneg %p1355_p11 }
  0x1a   : > { %p1084_p12 = scmp.ne.s32.totalorder %s1622_s2, %s1083_s6  ;;  %p1090_p5 = scmp.lt.u32.totalorder %s1083_s6, %s1622_s2 }
  0x1c   : > { %p1086_p0 = pnand %p1085_p13, %p1084_p12 }
  0x1e   : > { %p1087_p3 = pneg %p1086_p0 }
  0x20   : > { %p1092_p7 = pnand %p1090_p5, %p1087_p3 }
  0x22   : > { %1095 = shalt.err (!%p1092_p7)
}
  0x23   : > { %s1096_s11 = scalar_lea.vmem %s200_s27, 384  ;;  %p1104_p2 = scmp.lt.s32.totalorder %s200_s27, %s200_s27 }
  0x24   : > { %p1097_p9 = scmp.ne.s32.totalorder %s200_s27, %s1096_s11  ;;  %p1105_p6 = scmp.lt.s32.totalorder %s1096_s11, %s1096_s11 }
  0x26   : > { %p1099_p10 = pnand %p1097_p9, %p1085_p13  ;;  %p1106_p4 = por %p1105_p6, %p1104_p2 }
  0x28   : > { %p1100_p1 = pneg %p1099_p10 }
  0x2a   : > { %p1107_p8 = pnand %p1106_p4, %p1100_p1 }
  0x2c   : > { %1110 = shalt.err (!%p1107_p8)
}
  0x2d   : > { %s1611_s12 = smov 64   ;;  %s1613_s13 = smov 4  }
  0x2e   : > { %999 = dma.hbm_to_vmem [thread:$0]  (!%p1355_p11), %s1622_s2, 384, %s200_s27, [#allocation6], %s1611_s12, %s1611_s12, %s1613_s13  }
  0x2f   : > { %p40_p1 = scmp.ge.s32.totalorder %s38_s29, 2  ;;  %s51_s26 = sadd.s32 1, %s1249_s17 }
  0x30   : > { %p58_p2 = scmp.ne.s32.totalorder %s1249_s17, %s1245_s16  ;;  %p59_p4 = scmp.eq.s32.totalorder %s1261_s20, 0 }
  0x31   : > { %s1645_s29 = smov (%p40_p1, %s38_s29), 0  ;;  %p1624_p8 = scmp.eq.s32.totalorder %s1327_s21, 1 }
  0x32   : > { %1623 = sst [smem:[#allocation13_spill]] %s1645_s29  ;;  %p60_p6 = por %p59_p4, %p58_p2 }
  0x33   : > { %p1387_p10 = por %p1624_p8, %p58_p2  ;;  %s46_s30 = ssub.s32 %s1257_s19, %s1645_s29 }
  0x34   : > { %p1012_p12 = scmp.lt.s32.totalorder %s1261_s20, 2  ;;  %p49_p13 = scmp.eq.s32.totalorder %s46_s30, 0 }
  0x35   : > { %s219_s5 = sand.u32 1, %s1249_s17   ;;  %s1610_s7 = smul.u32 576, %s1257_s19 }
  0x36   : > { %s1395_s27 = smul.u32 36, %s219_s5  ;;  %p1402_p11 = pnand %p1012_p12, %p60_p6 }
  0x37   : > { %s1398_s6 = scalar_select %p49_p13, %s1249_s17, %s51_s26  }
  0x38   : > { %s223_s8 = scalar_lea.vmem [#allocation2], %s1395_s27  ;;  %s1627_s0 = sld [smem:[#allocation14_spill]] }
  0x39   : > { %s232_s9 = sshll.u32 %s223_s8, 4  ;;  %s1416_s30 = scalar_lea.sflag [#allocation3], %s219_s5  ;;  %s1413_s9 = int_to_ptr.vmem [resolvable:$true] %s232_s9 }
  0x3a   : > { %p1113_p3 = pneg %p1402_p11 }
  0x3e   : > { %s1411_s22 = scalar_lea.hbm %s1627_s0, %s1610_s7  ;;  %s1116_s7 = scalar_lea.hbm %s1627_s0, 1152 }
  0x3f   : > { %s1111_s8 = scalar_lea.hbm %s1411_s22, 576  ;;  %p1117_p9 = scmp.lt.u32.totalorder %s1411_s22, %s1627_s0 }
  0x40   : > { %p1112_p0 = scmp.ne.s32.totalorder %s1411_s22, %s1111_s8  ;;  %p1118_p1 = scmp.lt.u32.totalorder %s1116_s7, %s1111_s8 }
  0x41   : > { %p1120_p4 = scmp.lt.u32.totalorder %s1111_s8, %s1411_s22 }
  0x42   : > { %p1114_p5 = pnand %p1113_p3, %p1112_p0  ;;  %p1119_p2 = por %p1118_p1, %p1117_p9 }
  0x44   : > { %p1115_p7 = pneg %p1114_p5  ;;  %p1121_p6 = por %p1120_p4, %p1119_p2 }
  0x46   : > { %p1122_p8 = pnand %p1121_p6, %p1115_p7 }
  0x48   : > { %1125 = shalt.err (!%p1122_p8)
}
  0x49   : > { %s1126_s5 = scalar_lea.vmem %s1413_s9, 576  ;;  %s1266_s11 = smov [#allocation2]  }
  0x4a   : > { %p1127_p12 = scmp.ne.s32.totalorder %s1413_s9, %s1126_s5  ;;  %s1131_s14 = sshll.u32 %s1266_s11, 4  ;;  %s1132_s14 = int_to_ptr.vmem [resolvable:$false] %s1131_s14 }
  0x4b   : > { %s1133_s12 = scalar_lea.vmem %s1132_s14, 1152  ;;  %p1134_p5 = scmp.lt.s32.totalorder %s1413_s9, %s1132_s14 }
  0x4c   : > { %p1129_p13 = pnand %p1127_p12, %p1113_p3  ;;  %p1135_p9 = scmp.lt.s32.totalorder %s1133_s12, %s1126_s5 }
  0x4e   : > { %p1130_p0 = pneg %p1129_p13  ;;  %p1136_p1 = por %p1135_p9, %p1134_p5 }
  0x50   : > { %p1137_p2 = pnand %p1136_p1, %p1130_p0 }
  0x52   : > { %1140 = shalt.err (!%p1137_p2)
}
  0x53   : > { %s1628_s13 = smov 4   ;;  %s1629_s7 = smov 64  }
  0x54   : > { %1003 = dma.hbm_to_vmem [thread:$0]  (!%p1402_p11), %s1411_s22, 576, %s1413_s9, %s1416_s30, %s1629_s7, %s1629_s7, %s1628_s13  }
  0x55   : > { %s1630_s8 = smul.u32 576, %s1257_s19  ;;  %s246_s12 = scalar_lea.vmem [#allocation5], %s1395_s27 }
  0x56   : > { %s255_s26 = sshll.u32 %s246_s12, 4  ;;  %s1631_s0 = sand.u32 1, %s1261_s20   ;;  %s1455_s26 = int_to_ptr.vmem [resolvable:$true] %s255_s26 }
  0x57   : > { %s1452_s5 = scalar_lea.hbm %s1603_s1, %s1630_s8  ;;  %s1459_s2 = scalar_lea.sflag [#allocation6], %s1631_s0 }
  0x58   : > { %s1141_s29 = scalar_lea.hbm %s1452_s5, 576  ;;  %s1146_s30 = scalar_lea.hbm %s1603_s1, 1152 }
  0x59   : > { %p1142_p7 = scmp.ne.s32.totalorder %s1452_s5, %s1141_s29  ;;  %p1147_p8 = scmp.lt.u32.totalorder %s1452_s5, %s1603_s1 }
  0x5a   : > { %p1148_p12 = scmp.lt.u32.totalorder %s1146_s30, %s1141_s29  ;;  %p1150_p0 = scmp.lt.u32.totalorder %s1141_s29, %s1452_s5 }
  0x5b   : > { %p1144_p4 = pnand %p1142_p7, %p1113_p3 }
  0x5c   : > { %p1149_p13 = por %p1148_p12, %p1147_p8 }
  0x5d   : > { %p1145_p6 = pneg %p1144_p4 }
  0x5e   : > { %p1151_p5 = por %p1150_p0, %p1149_p13 }
  0x60   : > { %p1152_p9 = pnand %p1151_p5, %p1145_p6 }
  0x62   : > { %1155 = shalt.err (!%p1152_p9)
}
  0x63   : > { %s1156_s0 = scalar_lea.vmem %s1455_s26, 576  ;;  %s1267_s27 = smov [#allocation5]  }
  0x64   : > { %p1157_p1 = scmp.ne.s32.totalorder %s1455_s26, %s1156_s0  ;;  %s1161_s14 = sshll.u32 %s1267_s27, 4  ;;  %s1162_s14 = int_to_ptr.vmem [resolvable:$false] %s1161_s14 }
  0x65   : > { %s1163_s12 = scalar_lea.vmem %s1162_s14, 1152  ;;  %p1164_p4 = scmp.lt.s32.totalorder %s1455_s26, %s1162_s14 }
  0x66   : > { %p1159_p2 = pnand %p1157_p1, %p1113_p3  ;;  %p1165_p8 = scmp.lt.s32.totalorder %s1163_s12, %s1156_s0 }
  0x68   : > { %p1160_p7 = pneg %p1159_p2  ;;  %p1166_p12 = por %p1165_p8, %p1164_p4 }
  0x6a   : > { %p1167_p13 = pnand %p1166_p12, %p1160_p7 }
  0x6c   : > { %1170 = shalt.err (!%p1167_p13)
}
  0x6d   : > { %1006 = dma.hbm_to_vmem [thread:$0]  (!%p1402_p11), %s1452_s5, 576, %s1455_s26, %s1459_s2, %s1629_s7, %s1629_s7, %s1628_s13  }
  0x6e   : > { %p1632_p3 = scmp.ne.s32.totalorder %s1620_s25, 0 }
  0x6f   : > { %s1491_s29 = sand.u32 (!%p1632_p3), 1, %s1245_s16   ;;  %p1633_p6 = scmp.ne.s32.totalorder (!%p1632_p3), %s1618_s23, 0 }
  0x70   : > { %267 = sbr.rel (%p1632_p3) target bundleno = 385 (0x181), region = 36  ;;  %s270_s22 = scalar_lea.sflag (!%p1632_p3), [#allocation3], %s1491_s29 }
  0x71   : > { %s985_s9 = smul.u32 (!%p1632_p3), 36, %s1491_s29 }
  0x73   : > { %s1495_s30 = scalar_lea.vmem (!%p1632_p3), [#allocation2], %s985_s9 }
  0x77   : > { %1224 = dma.done.wait (%p1633_p6), %s270_s22, 576  }
  0x78   : > { %1226 = vsyncadd (%p1633_p6), %s270_s22, 4294966720  ;;  %s278_s2 = sand.u32 1, %s1327_s21   ;;  %s1502_s10 = scalar_lea.vmem [#allocation5], %s985_s9 }
  0x79   : > { %s279_s25 = scalar_lea.sflag [#allocation6], %s278_s2 }
  0x7a   : > { %1228 = dma.done.wait (%p1633_p6), %s279_s25, 576  }
  0x7b   : > { %1230 = vsyncadd (%p1633_p6), %s279_s25, 4294966720  ;;  %p1634_p11 = scmp.eq.s32.totalorder %s1327_s21, 0 }
  0x7d   : > { %1232 = dma.done.wait (%p1634_p11), [#allocation6], 384   ;;  %p1635_p0 = pmov %p1634_p11 }
  0x7e   : > { %vm391_vm0 = vcmask 1045504   ;;  %vm378_vm1 = vcmask 97280   ;;  %v1068_v0 = vld [vmem:[#allocation7 + $0x8] sm:$0x3f]   ;;  %v1069_v1 = vld [vmem:[#allocation7] sm:$0x3f]  }
  0x7f   : > { %1234 = vsyncadd (%p1635_p0), [#allocation6], 4294966912  ;;  %977 = vmatprep.subr.msk.bf16.mxu1 %vm391_vm0, %v1068_v0  ;;  %v393_v2 = vsel %vm391_vm0, %v1068_v0, 0  ;;  %v1070_v3 = vld [vmem:[%s1502_s10] sm:$0xff]   ;;  %978 = vmatprep.subr.msk.bf16.mxu0 %vm391_vm0, %v1069_v1  ;;  %v498_v4 = vsel %vm391_vm0, %v1069_v1, 0  ;;  %v1071_v5 = vld [vmem:[%s1495_s30] sm:$0xff]  }
  0x80   : > { %930 = vmatpush3.bf16.msra.mxu1 %v393_v2  ;;  %940 = vmatpush3.bf16.msra.mxu0 %v498_v4  ;;  %v1072_v6 = vld [vmem:[%s1502_s10 + $0x8] sm:$0xff]   ;;  %v1073_v7 = vld [vmem:[%s1495_s30 + $0x8] sm:$0xff]   ;;  %v1074_v8 = vld [vmem:[#allocation7 + $0x10] sm:$0x3f]   ;;  %s871_s21 = sshll.u32 %s1491_s29, 6  ;;  %s913_s5 = sshll.u32 %s1253_s18, 10 }
  0x81   : > { %931 = vmatprep.mubr.msk.bf16.mxu1 %vm378_vm1, %v1070_v3  ;;  %941 = vmatprep.mubr.msk.bf16.mxu0 %vm378_vm1, %v1071_v5  ;;  %v1075_v9 = vld [vmem:[%s1502_s10 + $0x10] sm:$0xff]   ;;  %v606_v10 = vsel %vm391_vm0, %v1074_v8, 0  ;;  %v1077_v11 = vld [vmem:[%s1495_s30 + $0x4] sm:$0xff]   ;;  %v1079_v13 = vld [vmem:[%s1495_s30 + $0x10] sm:$0xff]   ;;  %s318_s13 = scalar_lea.vmem [#allocation8], %s871_s21  ;;  %s1553_s0 = scalar_lea.hbm %s1606_s4, %s913_s5 }
  0x82   : > { %979 = vmatprep.subr.msk.bf16.mxu1 %vm391_vm0, %v1069_v1  ;;  %980 = vmatprep.subr.msk.bf16.mxu0 %vm391_vm0, %v1074_v8  ;;  %v1076_v12 = vld [vmem:[%s1502_s10 + $0x18] sm:$0xff]   ;;  %v1078_v14 = vld [vmem:[%s1495_s30 + $0xc] sm:$0xff]   ;;  %v1080_v15 = vld [vmem:[%s1495_s30 + $0x14] sm:$0xff]   ;;  %s721_s7 = sshll.u32 %s318_s13, 4  ;;  %s705_s18 = scalar_lea.sflag [#allocation4], %s1491_s29  ;;  %s1548_s7 = int_to_ptr.vmem [resolvable:$true] %s721_s7 }
  0x83   : > { %932 = vmatmul.mubr.msk.bf16.vlgmr.msra.gmra.mrb[0].mxu1 %vm378_vm1, %v1072_v6  ;;  %942 = vmatmul.mubr.msk.bf16.vlgmr.msra.gmra.mrb[0].mxu0 %vm378_vm1, %v1073_v7  ;;  %v1081_v16 = vld [vmem:[%s1495_s30 + $0x18] sm:$0xff]   ;;  %s1171_s27 = scalar_lea.vmem %s1548_s7, 1024  ;;  %s1268_s14 = smov [#allocation8]  }
  0x84   : > { %960 = vmatpush3.bf16.msra.mxu1 %v498_v4  ;;  %950 = vmatpush3.bf16.msra.mxu0 %v606_v10  ;;  %v1082_v17 = vld [vmem:[%s1495_s30 + $0x1c] sm:$0xff]   ;;  %p1172_p5 = scmp.ne.s32.totalorder %s1548_s7, %s1171_s27  ;;  %s1175_s12 = sshll.u32 %s1268_s14, 4  ;;  %s1176_s12 = int_to_ptr.vmem [resolvable:$false] %s1175_s12 }
  0x85   : > { %935 = vmatprep.mubr.msk.bf16.mxu1 %vm378_vm1, %v1075_v9  ;;  %951 = vmatprep.mubr.msk.bf16.mxu0 %vm378_vm1, %v1077_v11  ;;  %v907_v23 = vld [vmem:[%s1605_s3] ss:$0 sm:$0xff]  ;;  %s1177_s9 = scalar_lea.vmem %s1176_s12, 2048  ;;  %p1178_p2 = scmp.lt.s32.totalorder %s1548_s7, %s1176_s12 }
  0x86   : > { %p1173_p9 = pnand %p1172_p5, %p1387_p10  ;;  %p1179_p7 = scmp.lt.s32.totalorder %s1177_s9, %s1171_s27 }
  0x88   : > { %p1174_p1 = pneg %p1173_p9  ;;  %p1180_p4 = por %p1179_p7, %p1178_p2 }
  0x8a   : > { %p1181_p8 = pnand %p1180_p4, %p1174_p1 }
  0x8b   : > { %936 = vmatmul.mubr.msk.bf16.gmra.mrb[4].mxu1 %vm378_vm1, %v1076_v12 }
  0x8c   : > { %945 = vmatprep.mubr.msk.bf16.mxu1 %vm378_vm1, %v1079_v13 }
  0x8f   : > { %952 = vmatmul.mubr.msk.bf16.vlgmr.msra.gmra.mrb[0].mxu0 %vm378_vm1, %v1078_v14 }
  0x90   : > { %955 = vmatprep.mubr.msk.bf16.mxu0 %vm378_vm1, %v1080_v15 }
  0x97   : > { %946 = vmatmul.mubr.msk.bf16.vlgmr.msra.gmra.mrb[4].mxu1 %vm378_vm1, %v1081_v16  ;;  %956 = vmatmul.mubr.msk.bf16.gmra.mrb[4].mxu0 %vm378_vm1, %v1082_v17 }
 0x156   : > { %v933_v18 = vpop.f32.mrb[0].mxu1 }
 0x157   : > { %v429_v19 = vpop.f32.mrb[1].mxu1 }
 0x158   : > { %v934_v20 = vpop.f32.mrb[2].mxu1 }
 0x159   : > { %v432_v21 = vpop.f32.mrb[3].mxu1 }
 0x162   : > { %v953_v22 = vpop.f32.mrb[0].mxu0 }
 0x163   : > { %v961_v24 = vadd.f32 %v953_v22, %v933_v18  ;;  %v642_v25 = vpop.f32.mrb[1].mxu0 }
 0x164   : > { %v962_v26 = vadd.f32 %v642_v25, %v429_v19  ;;  %v954_v27 = vpop.f32.mrb[2].mxu0 }
 0x165   : > { %v690_v28 = vadd.f32 %v961_v24, %v907_v23  ;;  %v963_v29 = vadd.f32 %v954_v27, %v934_v20  ;;  %v645_v30 = vpop.f32.mrb[3].mxu0 }
 0x166   : > { %v688_v31 = vadd.f32 %v962_v26, %v907_v23  ;;  %v964_v32 = vadd.f32 %v645_v30, %v432_v21 }
 0x167   : > { %698 = vst [vmem:[%s318_s13 + $0x10] sm:$0xff] %v690_v28  ;;  %v691_v33 = vadd.f32 %v963_v29, %v907_v23 }
 0x168   : > { %696 = vst [vmem:[%s318_s13] sm:$0xff] %v688_v31  ;;  %v689_v34 = vadd.f32 %v964_v32, %v907_v23 }
 0x169   : > { %699 = vst [vmem:[%s318_s13 + $0x18] sm:$0xff] %v691_v33 }
 0x16a   : > { %v947_v35 = vpop.f32.mrb[4].mxu1  ;;  %697 = vst [vmem:[%s318_s13 + $0x8] sm:$0xff] %v689_v34  ;;  %v957_v36 = vpop.f32.mrb[4].mxu0 }
 0x16b   : > { %v550_v37 = vpop.f32.mrb[5].mxu1  ;;  %v965_v38 = vadd.f32 %v957_v36, %v947_v35  ;;  %v658_v39 = vpop.f32.mrb[5].mxu0 }
 0x16c   : > { %v948_v40 = vpop.f32.mrb[6].mxu1  ;;  %v966_v41 = vadd.f32 %v658_v39, %v550_v37  ;;  %v958_v42 = vpop.f32.mrb[6].mxu0 }
 0x16d   : > { %v553_v43 = vpop.f32.mrb[7].mxu1  ;;  %v694_v44 = vadd.f32 %v965_v38, %v907_v23  ;;  %v967_v45 = vadd.f32 %v958_v42, %v948_v40  ;;  %v661_v46 = vpop.f32.mrb[7].mxu0 }
 0x16e   : > { %v692_v47 = vadd.f32 %v966_v41, %v907_v23  ;;  %v968_v48 = vadd.f32 %v661_v46, %v553_v43 }
 0x16f   : > { %702 = vst [vmem:[%s318_s13 + $0x30] sm:$0xff] %v694_v44  ;;  %v695_v49 = vadd.f32 %v967_v45, %v907_v23 }
 0x170   : > { %700 = vst [vmem:[%s318_s13 + $0x20] sm:$0xff] %v692_v47  ;;  %v693_v50 = vadd.f32 %v968_v48, %v907_v23 }
 0x171   : > { %703 = vst [vmem:[%s318_s13 + $0x38] sm:$0xff] %v695_v49 }
 0x172   : > { %701 = vst [vmem:[%s318_s13 + $0x28] sm:$0xff] %v693_v50 }
 0x173   : > { %1184 = shalt.err (!%p1181_p8)
}
 0x174   : > { %s1185_s22 = scalar_lea.hbm %s1553_s0, 1024  ;;  %s1189_s25 = scalar_lea.hbm %s1606_s4, 2048 }
 0x175   : > { %p1186_p12 = scmp.ne.s32.totalorder %s1553_s0, %s1185_s22  ;;  %p1190_p6 = scmp.lt.u32.totalorder %s1553_s0, %s1606_s4 }
 0x176   : > { %p1191_p11 = scmp.lt.u32.totalorder %s1189_s25, %s1185_s22  ;;  %p1193_p5 = scmp.lt.u32.totalorder %s1185_s22, %s1553_s0 }
 0x177   : > { %p1187_p13 = pnand %p1186_p12, %p1387_p10 }
 0x178   : > { %p1192_p0 = por %p1191_p11, %p1190_p6 }
 0x179   : > { %p1188_p3 = pneg %p1187_p13 }
 0x17a   : > { %p1194_p9 = por %p1193_p5, %p1192_p0 }
 0x17c   : > { %p1195_p1 = pnand %p1194_p9, %p1188_p3 }
 0x17e   : > { %1198 = shalt.err (!%p1195_p1)
}
 0x17f   : > { %s1269_s23 = smov 128   ;;  %s1270_s26 = smov 8  }
 0x180   : > { %994 = dma.vmem_to_hbm [thread:$0]  (%p1387_p10), %s1548_s7, 1024, %s1553_s0, %s705_s18, %s1269_s23, %s1269_s23, %s1270_s26  }
 0x181 PF: > { %s736_s13 = sand.u32 1, %s1241_s15   ;;  %p1636_p2 = scmp.ne.s32.totalorder %s1619_s24, 0 }
 0x182   : > { %p1637_p7 = scmp.ge.s32.totalorder %s1261_s20, 2  ;;  %s737_s5 = scalar_lea.sflag [#allocation4], %s736_s13 }
 0x184   : > { %p1008_p4 = pnand %p1637_p7, %p1636_p2 }
 0x186   : > { %1236 = dma.done.wait (!%p1008_p4), %s737_s5, 1024  }
 0x187   : > { %1238 = vsyncadd (!%p1008_p4), %s737_s5, 4294966272  ;;  %s23_s20 = sadd.s32 1, %s1261_s20   ;;  %s1638_s28 = sld [smem:[#allocation13_spill]] }
 0x188   : > { %p20_p8 = scmp.ge.s32.totalorder %s23_s20, 4   ;;  %s1639_s15 = smov %s1245_s16 }
 0x189   : > { %s1640_s16 = smov %s1249_s17  ;;  %s1641_s17 = smov %s1398_s6 }
 0x18a   : > { %s1642_s18 = smov %s1257_s19  ;;  %22 = sbr.rel (!%p20_p8) target bundleno = 11 (0xb), region = 105 }
 0x18d   : > { %s1643_s19 = smov %s1638_s28 }
 0x191   :  { %742 = vsyncpa [#allocation3], 1 }
 0x192   :  { %744 = vsyncpa [#allocation3 + $0x1], 1 }
 0x193   :  { %745 = vsyncpa [#allocation6], 1 }
 0x194   :  { %747 = vsyncpa [#allocation6 + $0x1], 1 }
 0x195   :  { %748 = vsyncpa [#allocation4], 1 }
 0x196   :  { %750 = vsyncpa [#allocation4 + $0x1], 1 }

</bundles_post_ra>
